<compile_context>
chip_gen: v5e
topology: v5e:2x2
jax: 0.10.0
libtpu: 0.0.40
codegen_flags: <defaults>
</compile_context>

<pallas_src>
import jax
import jax.numpy as jnp
from jax.experimental import pallas as pl
from jax.experimental.pallas import tpu as pltpu


def _local_op_kernel(x_ref, w1_ref, w2_ref, b1_ref, b2_ref, o_ref):
    """One grid step: TG groups of conv1x1->BN->relu (x2) -> max-pool over S.

    x_ref : (TG, S, D)  input groups, channels-last
    w1_ref: (D, C)      conv1 weight^T with bn1 scale folded in
    w2_ref: (C, C)      conv2 weight^T with bn2 scale folded in
    b1_ref: (1, C)      folded bn1 shift
    b2_ref: (1, C)      folded bn2 shift
    o_ref : (C, TG)     pooled output (transposed -> lane-dense group axis)
    """
    tg, s, d = x_ref.shape
    c = w1_ref.shape[1]

    # Flatten (groups, length) into one tall M dimension so each 1x1 conv is a
    # single (TG*S, D) @ (D, C) MXU matmul with f32 accumulation.
    x = x_ref[...].reshape(tg * s, d)

    h = jnp.dot(x, w1_ref[...], preferred_element_type=jnp.float32)   # (TG*S, C)
    h = jnp.maximum(h + b1_ref[...], 0.0)                             # bn1 shift + relu

    h = jnp.dot(h, w2_ref[...], preferred_element_type=jnp.float32)   # (TG*S, C)
    h = jnp.maximum(h + b2_ref[...], 0.0)                             # bn2 shift + relu

    # adaptive_max_pool1d(., 1): max over the length axis of each group.
    pooled = jnp.max(h.reshape(tg, s, c), axis=1)                     # (TG, C)

    # Emit (C, TG): the transpose rides the (otherwise idle) XLU and makes the
    # output DMA dense along the group axis.
    o_ref[...] = jnp.transpose(pooled)


def _choose_group_tile(G, s):
    """Pick how many groups (TG) to process per grid step.

    Goals: TG*s >= ~512 matmul rows (amortize per-step grid overhead, tall MXU M),
    TG a multiple of 128 whenever the grid has more than one step (lane-dense,
    unmasked output stores), and >=2 grid steps once G is large enough so v7x's
    two TensorCores both get work.  Tiles stay well under the 32 MiB scoped-VMEM
    default even on v7x's 64 MiB VMEM for realistic (s, d).
    """
    if G <= 128:
        return G                      # single block; out block == full lane extent
    tg = 128
    while tg * 2 <= G and tg * s < 512:
        tg *= 2
    return tg


def local_op_forward(x, w1, w2, bn1_params, bn2_params, eps=1e-5):
    """x: (b, n, s, d) float32.  w1: (C, d), w2: (C, C) (1x1 Conv1d weights).

    bn*_params: (gamma, beta, running_mean, running_var), each shape (C,)
    (BatchNorm in eval mode).  Returns (b, C, n), matching the PyTorch module.
    """
    b, n, s, d = x.shape
    C = w1.shape[0]
    G = b * n

    # Fold eval-mode BN into per-channel scale/shift, then fold the scale into
    # the transposed conv weights (scale is linear, commutes with the matmul).
    def fold_bn(params):
        gamma, beta, mean, var = params
        scale = gamma * jax.lax.rsqrt(var + eps)
        shift = beta - mean * scale
        return scale, shift

    s1, b1 = fold_bn(bn1_params)
    s2, b2 = fold_bn(bn2_params)

    w1t = jnp.transpose(w1).astype(jnp.float32) * s1       # (D, C)
    w2t = jnp.transpose(w2).astype(jnp.float32) * s2       # (C, C)
    b1 = b1.reshape(1, C).astype(jnp.float32)
    b2 = b2.reshape(1, C).astype(jnp.float32)

    # (b, n, s, d) -> (G, S, D): channels-last per group (same data as the
    # PyTorch (b*n, d, s) layout, transposed, so 1x1 convs become matmuls).
    # TODO(synk): optionally cast x / weights to bfloat16 (keep f32 accumulation)
    # to halve HBM traffic when the accuracy budget allows.
    x_gsd = x.reshape(G, s, d).astype(jnp.float32)

    TG = _choose_group_tile(G, s)
    G_pad = pl.cdiv(G, TG) * TG
    if G_pad != G:
        x_gsd = jnp.pad(x_gsd, ((0, G_pad - G), (0, 0), (0, 0)))

    grid = (G_pad // TG,)

    flops = int(2 * G * s * (d * C + C * C))
    bytes_accessed = int((G * s * d + d * C + C * C + 2 * C + C * G) * 4)

    pooled_cg = pl.pallas_call(
        _local_op_kernel,
        out_shape=jax.ShapeDtypeStruct((C, G_pad), jnp.float32),
        grid_spec=pltpu.PrefetchScalarGridSpec(
            num_scalar_prefetch=0,
            grid=grid,
            in_specs=[
                pl.BlockSpec((TG, s, d), lambda g: (g, 0, 0)),  # x groups
                pl.BlockSpec((d, C), lambda g: (0, 0)),          # w1^T * bn1 scale
                pl.BlockSpec((C, C), lambda g: (0, 0)),          # w2^T * bn2 scale
                pl.BlockSpec((1, C), lambda g: (0, 0)),          # bn1 shift
                pl.BlockSpec((1, C), lambda g: (0, 0)),          # bn2 shift
            ],
            out_specs=pl.BlockSpec((C, TG), lambda g: (0, g)),   # (C, G) output
        ),
        compiler_params=pltpu.CompilerParams(
            dimension_semantics=("parallel",)),
        cost_estimate=pl.CostEstimate(
            flops=flops, transcendentals=0, bytes_accessed=bytes_accessed),
    )(x_gsd, w1t, w2t, b1, b2)

    pooled_cg = pooled_cg[:, :G]                              # (C, G)
    # (C, b*n) -> (b, C, n): the PyTorch final permute; since the kernel already
    # emits channels-major, this is only a batch-axis split here.
    return jnp.transpose(pooled_cg.reshape(C, b, n), (1, 0, 2))


def _reference(x, w1, w2, bn1_params, bn2_params, eps=1e-5):
    """Pure-JAX reference mirroring the PyTorch forward (BN in eval mode)."""
    b, n, s, d = x.shape
    C = w1.shape[0]
    xg = x.reshape(b * n, s, d)                       # (G, S, D)
    h = jnp.einsum("gsd,cd->gsc", xg, w1)
    g1, be1, m1, v1 = bn1_params
    h = jnp.maximum((h - m1) / jnp.sqrt(v1 + eps) * g1 + be1, 0.0)
    h = jnp.einsum("gsc,oc->gso", h, w2)
    g2, be2, m2, v2 = bn2_params
    h = jnp.maximum((h - m2) / jnp.sqrt(v2 + eps) * g2 + be2, 0.0)
    pooled = jnp.max(h, axis=1)                       # (G, C)
    return jnp.transpose(pooled.reshape(b, n, C), (0, 2, 1))


if __name__ == "__main__":
    key = jax.random.PRNGKey(0)
    b, n, s, d = 2, 4, 16, 16          # input (b, n, s, d)
    C = 32                             # out_channels

    k_x, k_w1, k_w2, k_g1, k_b1, k_m1, k_v1, k_g2, k_b2, k_m2, k_v2 = (
        jax.random.split(key, 11))

    x = jax.random.normal(k_x, (b, n, s, d), dtype=jnp.float32)
    # Conv1d(kernel_size=1, bias=False) weights: (out_channels, in_channels)
    w1 = jax.random.normal(k_w1, (C, d), dtype=jnp.float32) * 0.1
    w2 = jax.random.normal(k_w2, (C, C), dtype=jnp.float32) * 0.1
    # BatchNorm1d parameters (eval-mode semantics), deterministic synthetic values.
    bn1 = (jax.random.normal(k_g1, (C,)) * 0.1 + 1.0,
           jax.random.normal(k_b1, (C,)) * 0.1,
           jax.random.normal(k_m1, (C,)) * 0.1,
           jax.nn.softplus(jax.random.normal(k_v1, (C,))) + 0.5)
    bn2 = (jax.random.normal(k_g2, (C,)) * 0.1 + 1.0,
           jax.random.normal(k_b2, (C,)) * 0.1,
           jax.random.normal(k_m2, (C,)) * 0.1,
           jax.nn.softplus(jax.random.normal(k_v2, (C,))) + 0.5)

    out = jax.block_until_ready(local_op_forward(x, w1, w2, bn1, bn2))
    ref = _reference(x, w1, w2, bn1, bn2)

    assert out.shape == (b, C, n), out.shape
    assert jnp.allclose(out, ref, atol=1e-4, rtol=1e-4), (
        float(jnp.max(jnp.abs(out - ref))))
    print("KERNEL_OK")
</pallas_src>

<mosaic_0001>
module attributes {stable_mosaic.version = 11 : i64} {
  func.func @_local_op_kernel(%arg0: i32, %arg1: memref<8x16x16xf32, #tpu.memory_space<vmem>>, %arg2: memref<16x32xf32, #tpu.memory_space<vmem>>, %arg3: memref<32x32xf32, #tpu.memory_space<vmem>>, %arg4: memref<1x32xf32, #tpu.memory_space<vmem>>, %arg5: memref<1x32xf32, #tpu.memory_space<vmem>>, %arg6: memref<32x8xf32, #tpu.memory_space<vmem>>) attributes {dimension_semantics = [#tpu.dimension_semantics<parallel>], iteration_bounds = array<i64: 1>, scalar_prefetch = 0 : i64, scratch_operands = 0 : i64, tpu.core_type = #tpu.core_type<tc>, window_params = [{transform_indices = @transform_0, window_bounds = array<i64: 8, 16, 16>}, {pipeline_mode = #tpu.pipeline_mode<synchronous>, transform_indices = @transform_1, window_bounds = array<i64: 16, 32>}, {pipeline_mode = #tpu.pipeline_mode<synchronous>, transform_indices = @transform_2, window_bounds = array<i64: 32, 32>}, {pipeline_mode = #tpu.pipeline_mode<synchronous>, transform_indices = @transform_3, window_bounds = array<i64: 1, 32>}, {pipeline_mode = #tpu.pipeline_mode<synchronous>, transform_indices = @transform_4, window_bounds = array<i64: 1, 32>}, {transform_indices = @transform_5, window_bounds = array<i64: 32, 8>}]} {
    %c0 = arith.constant 0 : index
    %c0_0 = arith.constant 0 : index
    %c0_1 = arith.constant 0 : index
    %0 = vector.load %arg1[%c0, %c0_0, %c0_1] : memref<8x16x16xf32, #tpu.memory_space<vmem>>, vector<8x16x16xf32>
    %1 = vector.shape_cast %0 : vector<8x16x16xf32> to vector<128x16xf32>
    %c0_2 = arith.constant 0 : index
    %c0_3 = arith.constant 0 : index
    %2 = vector.load %arg2[%c0_2, %c0_3] : memref<16x32xf32, #tpu.memory_space<vmem>>, vector<16x32xf32>
    %cst = arith.constant dense<0.000000e+00> : vector<128x32xf32>
    %3 = tpu.matmul %1, %2, %cst {dimension_numbers = #tpu.dot_dimension_numbers<[1], [0], [0], [1], [0, 0, 1, 1], [], []>} : vector<128x16xf32>, vector<16x32xf32>, vector<128x32xf32> -> vector<128x32xf32>
    %c0_4 = arith.constant 0 : index
    %c0_5 = arith.constant 0 : index
    %4 = vector.load %arg4[%c0_4, %c0_5] : memref<1x32xf32, #tpu.memory_space<vmem>>, vector<1x32xf32>
    %5 = vector.broadcast %4 : vector<1x32xf32> to vector<128x32xf32>
    %6 = arith.addf %3, %5 : vector<128x32xf32>
    %cst_6 = arith.constant 0.000000e+00 : f32
    %7 = vector.broadcast %cst_6 : f32 to vector<128x32xf32>
    %8 = arith.maximumf %6, %7 : vector<128x32xf32>
    %c0_7 = arith.constant 0 : index
    %c0_8 = arith.constant 0 : index
    %9 = vector.load %arg3[%c0_7, %c0_8] : memref<32x32xf32, #tpu.memory_space<vmem>>, vector<32x32xf32>
    %cst_9 = arith.constant dense<0.000000e+00> : vector<128x32xf32>
    %10 = tpu.matmul %8, %9, %cst_9 {dimension_numbers = #tpu.dot_dimension_numbers<[1], [0], [0], [1], [0, 0, 1, 1], [], []>} : vector<128x32xf32>, vector<32x32xf32>, vector<128x32xf32> -> vector<128x32xf32>
    %c0_10 = arith.constant 0 : index
    %c0_11 = arith.constant 0 : index
    %11 = vector.load %arg5[%c0_10, %c0_11] : memref<1x32xf32, #tpu.memory_space<vmem>>, vector<1x32xf32>
    %12 = vector.broadcast %11 : vector<1x32xf32> to vector<128x32xf32>
    %13 = arith.addf %10, %12 : vector<128x32xf32>
    %cst_12 = arith.constant 0.000000e+00 : f32
    %14 = vector.broadcast %cst_12 : f32 to vector<128x32xf32>
    %15 = arith.maximumf %13, %14 : vector<128x32xf32>
    %16 = vector.shape_cast %15 : vector<128x32xf32> to vector<8x16x32xf32>
    %cst_13 = arith.constant dense<0xFF800000> : vector<8x32xf32>
    %17 = vector.multi_reduction <maximumf>, %16, %cst_13 [1] : vector<8x16x32xf32> to vector<8x32xf32>
    %18 = tpu.transpose %17, [1, 0] : vector<8x32xf32> -> vector<32x8xf32>
    %c0_14 = arith.constant 0 : index
    %c0_15 = arith.constant 0 : index
    %19 = vector.load %arg6[%c0_14, %c0_15] : memref<32x8xf32, #tpu.memory_space<vmem>>, vector<32x8xf32>
    tpu.vector_store %arg6[%c0_14, %c0_15], %18 {strides = array<i32>} : memref<32x8xf32, #tpu.memory_space<vmem>>, vector<32x8xf32>,
    return
  }
  func.func @transform_0(%arg0: i32) -> (i32, i32, i32) {
    %c0_i32 = arith.constant 0 : i32
    %c0_i32_0 = arith.constant 0 : i32
    %c0_i32_1 = arith.constant 0 : i32
    return %arg0, %c0_i32, %c0_i32_0 : i32, i32, i32
  }
  func.func @transform_1(%arg0: i32) -> (i32, i32) {
    %c0_i32 = arith.constant 0 : i32
    %c0_i32_0 = arith.constant 0 : i32
    %c0_i32_1 = arith.constant 0 : i32
    return %c0_i32, %c0_i32_0 : i32, i32
  }
  func.func @transform_2(%arg0: i32) -> (i32, i32) {
    %c0_i32 = arith.constant 0 : i32
    %c0_i32_0 = arith.constant 0 : i32
    %c0_i32_1 = arith.constant 0 : i32
    return %c0_i32, %c0_i32_0 : i32, i32
  }
  func.func @transform_3(%arg0: i32) -> (i32, i32) {
    %c0_i32 = arith.constant 0 : i32
    %c0_i32_0 = arith.constant 0 : i32
    %c0_i32_1 = arith.constant 0 : i32
    return %c0_i32, %c0_i32_0 : i32, i32
  }
  func.func @transform_4(%arg0: i32) -> (i32, i32) {
    %c0_i32 = arith.constant 0 : i32
    %c0_i32_0 = arith.constant 0 : i32
    %c0_i32_1 = arith.constant 0 : i32
    return %c0_i32, %c0_i32_0 : i32, i32
  }
  func.func @transform_5(%arg0: i32) -> (i32, i32) {
    %c0_i32 = arith.constant 0 : i32
    %c0_i32_0 = arith.constant 0 : i32
    return %c0_i32, %arg0 : i32, i32
  }
}

</mosaic_0001>

<bundles_post_ra>
// kernel: tpu_custom_call.1
= control target key start
LH: loop header
LB: loop body
LE: loop exit
PB: predicated region body
PF: predicated region fallthrough
CT: control target
= control target key end

     0   :  { %10 = vsyncpa [#allocation3], 0  ;;  %s763_s0 = inlined_call_operand.hbm [shape: f32[8,16,16], index: 0, kind: input, shape index: {}]   ;;  %s764_s1 = inlined_call_operand.hbm [shape: f32[16,32], index: 1, kind: input, shape index: {}]   ;;  %s765_s2 = inlined_call_operand.hbm [shape: f32[32,32], index: 2, kind: input, shape index: {}]   ;;  %s766_s3 = inlined_call_operand.vmem [shape: f32[1,32], index: 3, kind: input, shape index: {}]   ;;  %s767_s4 = inlined_call_operand.vmem [shape: f32[1,32], index: 4, kind: input, shape index: {}]   ;;  %s768_s5 = inlined_call_operand.vmem [shape: f32[32,8], index: 5, kind: output, shape index: {}]  }
   0x1   :  { %11 = vsyncpa [#allocation5], 0  ;;  %s29_s20 = sshll.u32 %s764_s1, 4  ;;  %s617_s21 = smov [#allocation4]   ;;  %s30_s20 = int_to_ptr.hbm [resolvable:$true] %s29_s20 }
   0x2   :  { %s31_s22 = sshll.u32 %s617_s21, 4  ;;  %s16_s25 = sshll.u32 %s763_s0, 4  ;;  %s32_s22 = int_to_ptr.vmem [resolvable:$true] %s31_s22  ;;  %s17_s25 = int_to_ptr.hbm [resolvable:$true] %s16_s25 }
   0x3   :  { %s618_s26 = smov 128   ;;  %s619_s27 = smov 8  }
   0x4   :  { %37 = dma.hbm_to_vmem [thread:$0]  %s30_s20, 256, %s32_s22, [#allocation5], %s618_s26, %s618_s26, %s619_s27  }
   0x5   :  { %s620_s28 = smov [#allocation2]   ;;  %s42_s7 = sshll.u32 %s765_s2, 4  ;;  %s43_s7 = int_to_ptr.hbm [resolvable:$true] %s42_s7 }
   0x6   :  { %s18_s29 = sshll.u32 %s620_s28, 4  ;;  %s621_s1 = smov [#allocation6]   ;;  %s19_s29 = int_to_ptr.vmem [resolvable:$true] %s18_s29 }
   0x7   :  { %24 = dma.hbm_to_vmem [thread:$0]  %s17_s25, 2048, %s19_s29, [#allocation3], %s618_s26, %s618_s26, %s619_s27  }
   0x8   :  { %s44_s8 = sshll.u32 %s621_s1, 4  ;;  %s45_s8 = int_to_ptr.vmem [resolvable:$true] %s44_s8 }
   0x9   :  { %50 = dma.hbm_to_vmem [thread:$0]  %s43_s7, 512, %s45_s8, [#allocation5], %s618_s26, %s618_s26, %s619_s27  }
   0xa   :  { %613 = dma.done.wait [#allocation3], 2048  }
   0xb   :  { %614 = vsyncadd [#allocation3], 4294965248 }
   0xc   :  { %615 = dma.done.wait [#allocation5], 768  }
   0xd   :  { %616 = vsyncadd [#allocation5], 4294966528  ;;  %v84_v0 = vld [vmem:[#allocation4 + $0x8] sm:$0xff]  ;;  %v83_v1 = vld [vmem:[#allocation4] sm:$0xff]  ;;  %vm89_vm0 = vcmask 130048   ;;  %vm227_vm1 = vcmask 261120  }
   0xe   :  { %152 = vmatpush.msra.mxu0 %v84_v0  ;;  %v67_v2 = vld [vmem:[#allocation2] sm:$0xff]  ;;  %527 = vmatpush.msra.mxu3 %v84_v0  ;;  %v68_v3 = vld [vmem:[#allocation2 + $0x8] sm:$0xff]  ;;  %v69_v4 = vld [vmem:[#allocation2 + $0x10] sm:$0xff]  ;;  %vm437_vm2 = vcmask 1041409   ;;  %vm439_vm3 = vcmask 1042434   ;;  %vm441_vm4 = vcmask 1043459  }
   0xf   :  { %v70_v5 = vld [vmem:[#allocation2 + $0x18] sm:$0xff]  ;;  %v71_v6 = vld [vmem:[#allocation2 + $0x20] sm:$0xff]  ;;  %v76_v7 = vld [vmem:[#allocation2 + $0x48] sm:$0xff]  ;;  %vm443_vm5 = vcmask 1044484   ;;  %vm445_vm6 = vcmask 1045509   ;;  %vm447_vm7 = vcmask 1046534  }
  0x10   :  { %153 = vmatpush.msra.mxu0 %v83_v1  ;;  %528 = vmatpush.msra.mxu3 %v83_v1  ;;  %v72_v8 = vld [vmem:[#allocation2 + $0x28] sm:$0xff]  ;;  %v77_v9 = vld [vmem:[#allocation2 + $0x50] sm:$0xff]  ;;  %v78_v11 = vld [vmem:[#allocation2 + $0x58] sm:$0xff]  ;;  %vm449_vm8 = vcmask 1047559   ;;  %vm484_vm9 = vcmask 64512  }
  0x11   :  { %495 = vmatmul.msk.f32.vlgmr.msra.gmra.mxu0 %vm89_vm0, %v67_v2  ;;  %504 = vmatmul.msk.f32.vlgmr.msra.gmra.mxu3 %vm89_vm0, %v76_v7  ;;  %v73_v10 = vld [vmem:[#allocation2 + $0x30] sm:$0xff]  ;;  %v222_v12 = vld [vmem:[#allocation6 + $0x18] sm:$0xff]  ;;  %v74_v13 = vld [vmem:[#allocation2 + $0x38] sm:$0xff] }
  0x12   :  { %288 = vmatpush.msra.mxu1 %v222_v12  ;;  %529 = vmatpush.msra.mxu2 %v222_v12  ;;  %v79_v14 = vld [vmem:[#allocation2 + $0x60] sm:$0xff]  ;;  %v80_v16 = vld [vmem:[#allocation2 + $0x68] sm:$0xff]  ;;  %v81_v17 = vld [vmem:[#allocation2 + $0x70] sm:$0xff] }
  0x13   :  { %v75_v15 = vld [vmem:[#allocation2 + $0x40] sm:$0xff]  ;;  %v82_v18 = vld [vmem:[#allocation2 + $0x78] sm:$0xff]  ;;  %v219_v21 = vld [vmem:[#allocation6] sm:$0xff] }
  0x14   :  { %v221_v19 = vld [vmem:[#allocation6 + $0x10] sm:$0xff]  ;;  %v220_v20 = vld [vmem:[#allocation6 + $0x8] sm:$0xff] }
  0x15   :  { %289 = vmatpush.msra.mxu1 %v221_v19  ;;  %530 = vmatpush.msra.mxu2 %v221_v19  ;;  %v680_v22 = vld [vmem:[%s766_s3] ss:$0 sm:$0xff] }
  0x17   :  { %290 = vmatpush.msra.mxu1 %v220_v20  ;;  %531 = vmatpush.msra.mxu2 %v220_v20 }
  0x19   :  { %496 = vmatmul.msk.f32.gmra.mxu0 %vm89_vm0, %v68_v3  ;;  %505 = vmatmul.msk.f32.gmra.mxu3 %vm89_vm0, %v77_v9 }
  0x1a   :  { %291 = vmatpush.msra.mxu1 %v219_v21  ;;  %532 = vmatpush.msra.mxu2 %v219_v21 }
  0x21   :  { %497 = vmatmul.msk.f32.gmra.mxu0 %vm89_vm0, %v69_v4  ;;  %506 = vmatmul.msk.f32.gmra.mxu3 %vm89_vm0, %v78_v11 }
  0x29   :  { %498 = vmatmul.msk.f32.gmra.mxu0 %vm89_vm0, %v70_v5  ;;  %507 = vmatmul.msk.f32.gmra.mxu3 %vm89_vm0, %v79_v14 }
  0x31   :  { %499 = vmatmul.msk.f32.gmra.mxu0 %vm89_vm0, %v71_v6  ;;  %508 = vmatmul.msk.f32.gmra.mxu3 %vm89_vm0, %v80_v16 }
  0x39   :  { %500 = vmatmul.msk.f32.gmra.mxu0 %vm89_vm0, %v72_v8  ;;  %509 = vmatmul.msk.f32.gmra.mxu3 %vm89_vm0, %v81_v17 }
  0x41   :  { %501 = vmatmul.msk.f32.gmra.mxu0 %vm89_vm0, %v73_v10  ;;  %510 = vmatmul.msk.f32.gmra.mxu3 %vm89_vm0, %v82_v18  ;;  %v717_v18 = vld [vmem:[%s767_s4] ss:$0 sm:$0xff] }
  0x49   :  { %502 = vmatmul.msk.f32.gmra.mxu0 %vm89_vm0, %v74_v13 }
  0x51   :  { %503 = vmatmul.msk.f32.gmra.mxu0 %vm89_vm0, %v75_v15 }
  0x8e   :  { %v155_v23 = vpop.f32.mrf.mxu0 }
  0x8f   :  { %v156_v24 = vadd.f32 %v680_v22, %v155_v23 }
  0x91   :  { %v203_v25 = vmax.f32 %v156_v24, 0.0 }
  0x93   :  { %511 = vmatmul.msk.f32.vlgmr.msra.gmra.mxu1 %vm227_vm1, %v203_v25 }
  0x94   :  { %v182_v44 = vpop.f32.mrf.mxu3 }
  0x95   :  { %v183_v52 = vadd.f32 %v680_v22, %v182_v44 }
  0x96   :  { %v158_v26 = vpop.f32.mrf.mxu0 }
  0x97   :  { %v159_v27 = vadd.f32 %v680_v22, %v158_v26  ;;  %v212_v53 = vmax.f32 %v183_v52, 0.0 }
  0x99   :  { %v204_v28 = vmax.f32 %v159_v27, 0.0 }
  0x9b   :  { %512 = vmatmul.msk.f32.gmra.mxu1 %vm227_vm1, %v204_v28 }
  0x9c   :  { %v185_v49 = vpop.f32.mrf.mxu3 }
  0x9d   :  { %v186_v55 = vadd.f32 %v680_v22, %v185_v49 }
  0x9e   :  { %v161_v29 = vpop.f32.mrf.mxu0 }
  0x9f   :  { %v162_v30 = vadd.f32 %v680_v22, %v161_v29  ;;  %v213_v56 = vmax.f32 %v186_v55, 0.0 }
  0xa1   :  { %v205_v31 = vmax.f32 %v162_v30, 0.0 }
  0xa3   :  { %513 = vmatmul.msk.f32.gmra.mxu1 %vm227_vm1, %v205_v31 }
  0xa4   :  { %v188_v54 = vpop.f32.mrf.mxu3 }
  0xa5   :  { %v189_v58 = vadd.f32 %v680_v22, %v188_v54 }
  0xa6   :  { %v164_v32 = vpop.f32.mrf.mxu0 }
  0xa7   :  { %v165_v33 = vadd.f32 %v680_v22, %v164_v32  ;;  %v214_v59 = vmax.f32 %v189_v58, 0.0 }
  0xa9   :  { %v206_v34 = vmax.f32 %v165_v33, 0.0 }
  0xab   :  { %514 = vmatmul.msk.f32.gmra.mxu1 %vm227_vm1, %v206_v34 }
  0xac   :  { %v191_v57 = vpop.f32.mrf.mxu3 }
  0xad   :  { %v192_v60 = vadd.f32 %v680_v22, %v191_v57 }
  0xae   :  { %v167_v35 = vpop.f32.mrf.mxu0 }
  0xaf   :  { %v168_v36 = vadd.f32 %v680_v22, %v167_v35  ;;  %v215_v62 = vmax.f32 %v192_v60, 0.0 }
  0xb1   :  { %v207_v37 = vmax.f32 %v168_v36, 0.0 }
  0xb3   :  { %515 = vmatmul.msk.f32.gmra.mxu1 %vm227_vm1, %v207_v37 }
  0xb4   :  { %v194_v61 = vpop.f32.mrf.mxu3 }
  0xb5   :  { %v195_v63 = vadd.f32 %v680_v22, %v194_v61 }
  0xb6   :  { %v170_v38 = vpop.f32.mrf.mxu0 }
  0xb7   :  { %v171_v39 = vadd.f32 %v680_v22, %v170_v38  ;;  %v216_v1 = vmax.f32 %v195_v63, 0.0 }
  0xb9   :  { %v208_v40 = vmax.f32 %v171_v39, 0.0 }
  0xbb   :  { %516 = vmatmul.msk.f32.gmra.mxu1 %vm227_vm1, %v208_v40 }
  0xbc   :  { %v197_v0 = vpop.f32.mrf.mxu3 }
  0xbd   :  { %v198_v2 = vadd.f32 %v680_v22, %v197_v0 }
  0xbe   :  { %v173_v41 = vpop.f32.mrf.mxu0 }
  0xbf   :  { %v174_v42 = vadd.f32 %v680_v22, %v173_v41  ;;  %v217_v3 = vmax.f32 %v198_v2, 0.0 }
  0xc1   :  { %v209_v43 = vmax.f32 %v174_v42, 0.0 }
  0xc3   :  { %517 = vmatmul.msk.f32.gmra.mxu1 %vm227_vm1, %v209_v43 }
  0xc4   :  { %v200_v4 = vpop.f32.mrf.mxu3 }
  0xc5   :  { %v201_v5 = vadd.f32 %v680_v22, %v200_v4 }
  0xc6   :  { %v176_v45 = vpop.f32.mrf.mxu0 }
  0xc7   :  { %v177_v46 = vadd.f32 %v680_v22, %v176_v45  ;;  %v218_v6 = vmax.f32 %v201_v5, 0.0 }
  0xc9   :  { %v210_v47 = vmax.f32 %v177_v46, 0.0 }
  0xcb   :  { %518 = vmatmul.msk.f32.gmra.mxu1 %vm227_vm1, %v210_v47 }
  0xce   :  { %v179_v48 = vpop.f32.mrf.mxu0 }
  0xcf   :  { %v180_v50 = vadd.f32 %v680_v22, %v179_v48 }
  0xd1   :  { %v211_v51 = vmax.f32 %v180_v50, 0.0 }
  0xd3   :  { %519 = vmatmul.msk.f32.vlgmr.msra.gmra.mxu2 %vm227_vm1, %v211_v51 }
  0xdb   :  { %520 = vmatmul.msk.f32.gmra.mxu2 %vm227_vm1, %v212_v53 }
  0xe3   :  { %521 = vmatmul.msk.f32.gmra.mxu2 %vm227_vm1, %v213_v56 }
  0xeb   :  { %522 = vmatmul.msk.f32.gmra.mxu2 %vm227_vm1, %v214_v59 }
  0xf3   :  { %523 = vmatmul.msk.f32.gmra.mxu2 %vm227_vm1, %v215_v62 }
  0xfb   :  { %524 = vmatmul.msk.f32.gmra.mxu2 %vm227_vm1, %v216_v1 }
 0x103   :  { %525 = vmatmul.msk.f32.gmra.mxu2 %vm227_vm1, %v217_v3 }
 0x10b   :  { %526 = vmatmul.msk.f32.gmra.mxu2 %vm227_vm1, %v218_v6 }
 0x110   :  { %v293_v7 = vpop.f32.mrf.mxu1 }
 0x111   :  { %v294_v21 = vadd.f32 %v717_v18, %v293_v7 }
 0x113   :  { %v341_v32 = vmax.f32 %v294_v21, 0.0 }
 0x115   :  { %v357_v45 = vsel %vm227_vm1, %v341_v32, -inf }
 0x118   :  { %v296_v8 = vpop.f32.mrf.mxu1 }
 0x119   :  { %v297_v22 = vadd.f32 %v717_v18, %v296_v8 }
 0x11b   :  { %v342_v33 = vmax.f32 %v297_v22, 0.0 }
 0x11d   :  { %v358_v46 = vsel %vm227_vm1, %v342_v33, -inf }
 0x11e   :  { %v359_v62 = vmax.f32 %v357_v45, %v358_v46 }
 0x120   :  { %v299_v9 = vpop.f32.mrf.mxu1 }
 0x121   :  { %v300_v25 = vadd.f32 %v717_v18, %v299_v9  ;;  %v360_v9 = vrot.slane %v359_v62, 4 }
 0x123   :  { %v343_v36 = vmax.f32 %v300_v25, 0.0 }
 0x125   :  { %v366_v50 = vsel %vm227_vm1, %v343_v36, -inf }
 0x128   :  { %v302_v10 = vpop.f32.mrf.mxu1 }
 0x129   :  { %v303_v20 = vadd.f32 %v717_v18, %v302_v10 }
 0x12b   :  { %v344_v29 = vmax.f32 %v303_v20, 0.0 }
 0x12d   :  { %v367_v42 = vsel %vm227_vm1, %v344_v29, -inf }
 0x12e   :  { %v368_v54 = vmax.f32 %v366_v50, %v367_v42 }
 0x130   :  { %v305_v11 = vpop.f32.mrf.mxu1  ;;  %v369_v4 = vrot.slane %v368_v54, 4 }
 0x131   :  { %v306_v27 = vadd.f32 %v717_v18, %v305_v11 }
 0x133   :  { %v345_v39 = vmax.f32 %v306_v27, 0.0 }
 0x135   :  { %v375_v55 = vsel %vm227_vm1, %v345_v39, -inf }
 0x138   :  { %v308_v14 = vpop.f32.mrf.mxu1 }
 0x139   :  { %v309_v23 = vadd.f32 %v717_v18, %v308_v14 }
 0x13b   :  { %v346_v34 = vmax.f32 %v309_v23, 0.0 }
 0x13d   :  { %v376_v47 = vsel %vm227_vm1, %v346_v34, -inf }
 0x13e   :  { %v377_v58 = vmax.f32 %v375_v55, %v376_v47 }
 0x140   :  { %v311_v16 = vpop.f32.mrf.mxu1  ;;  %v378_v7 = vrot.slane %v377_v58, 4 }
 0x141   :  { %v312_v30 = vadd.f32 %v717_v18, %v311_v16 }
 0x143   :  { %v347_v43 = vmax.f32 %v312_v30, 0.0 }
 0x145   :  { %v384_v59 = vsel %vm227_vm1, %v347_v43, -inf }
 0x148   :  { %v314_v19 = vpop.f32.mrf.mxu1 }
 0x149   :  { %v315_v26 = vadd.f32 %v717_v18, %v314_v19 }
 0x14b   :  { %v348_v37 = vmax.f32 %v315_v26, 0.0 }
 0x14d   :  { %v385_v51 = vsel %vm227_vm1, %v348_v37, -inf }
 0x14e   :  { %v386_v63 = vmax.f32 %v384_v59, %v385_v51 }
 0x150   :  { %v387_v10 = vrot.slane %v386_v63, 4 }
 0x152   :  { %v388_v19 = vmax.f32 %v386_v63, %v387_v10 }
 0x154   :  { %v389_v27 = vrot.slane %v388_v19, 2 }
 0x156   :  { %v317_v12 = vpop.f32.mrf.mxu2 }
 0x157   :  { %v318_v35 = vadd.f32 %v717_v18, %v317_v12 }
 0x159   :  { %v349_v48 = vmax.f32 %v318_v35, 0.0 }
 0x15b   :  { %v393_v0 = vsel %vm227_vm1, %v349_v48, -inf }
 0x15e   :  { %v320_v13 = vpop.f32.mrf.mxu2 }
 0x15f   :  { %v321_v28 = vadd.f32 %v717_v18, %v320_v13  ;;  %v370_v13 = vmax.f32 %v368_v54, %v369_v4 }
 0x161   :  { %v350_v40 = vmax.f32 %v321_v28, 0.0  ;;  %v371_v22 = vrot.slane %v370_v13, 2 }
 0x163   :  { %v394_v56 = vsel %vm227_vm1, %v350_v40, -inf  ;;  %v372_v32 = vmax.f32 %v370_v13, %v371_v22 }
 0x164   :  { %v395_v1 = vmax.f32 %v393_v0, %v394_v56 }
 0x165   :  { %v373_v42 = vrot.slane %v372_v32, 1 }
 0x166   :  { %v323_v15 = vpop.f32.mrf.mxu2  ;;  %v396_v12 = vrot.slane %v395_v1, 4 }
 0x167   :  { %v324_v38 = vadd.f32 %v717_v18, %v323_v15  ;;  %v379_v15 = vmax.f32 %v377_v58, %v378_v7  ;;  %v374_v50 = vmax.f32 %v372_v32, %v373_v42 }
 0x168   :  { %v397_v20 = vmax.f32 %v395_v1, %v396_v12 }
 0x169   :  { %v351_v52 = vmax.f32 %v324_v38, 0.0  ;;  %v390_v38 = vmax.f32 %v388_v19, %v389_v27 }
 0x16a   :  { %v398_v29 = vrot.slane %v397_v20, 2 }
 0x16b   :  { %v402_v2 = vsel %vm227_vm1, %v351_v52, -inf  ;;  %v391_v48 = vrot.slane %v390_v38, 1 }
 0x16c   :  { %v399_v39 = vmax.f32 %v397_v20, %v398_v29 }
 0x16d   :  { %v392_v56 = vmax.f32 %v390_v38, %v391_v48 }
 0x16e   :  { %v326_v17 = vpop.f32.mrf.mxu2 }
 0x16f   :  { %v327_v31 = vadd.f32 %v717_v18, %v326_v17  ;;  %v361_v17 = vmax.f32 %v359_v62, %v360_v9 }
 0x171   :  { %v352_v44 = vmax.f32 %v327_v31, 0.0  ;;  %v362_v26 = vrot.slane %v361_v17, 2 }
 0x173   :  { %v403_v60 = vsel %vm227_vm1, %v352_v44, -inf  ;;  %v363_v37 = vmax.f32 %v361_v17, %v362_v26 }
 0x174   :  { %v404_v5 = vmax.f32 %v402_v2, %v403_v60 }
 0x175   :  { %v364_v47 = vrot.slane %v363_v37, 1 }
 0x176   :  { %v329_v24 = vpop.f32.mrf.mxu2  ;;  %v405_v14 = vrot.slane %v404_v5, 4 }
 0x177   :  { %v330_v41 = vadd.f32 %v717_v18, %v329_v24  ;;  %v380_v24 = vrot.slane %v379_v15, 2  ;;  %v365_v55 = vmax.f32 %v363_v37, %v364_v47 }
 0x178   :  { %v406_v23 = vmax.f32 %v404_v5, %v405_v14 }
 0x179   :  { %v353_v57 = vmax.f32 %v330_v41, 0.0  ;;  %v381_v34 = vmax.f32 %v379_v15, %v380_v24 }
 0x17a   :  { %v407_v33 = vrot.slane %v406_v23, 2 }
 0x17b   :  { %v411_v6 = vsel %vm227_vm1, %v353_v57, -inf  ;;  %v382_v45 = vrot.slane %v381_v34, 1 }
 0x17c   :  { %v408_v43 = vmax.f32 %v406_v23, %v407_v33 }
 0x17e   :  { %v332_v49 = vpop.f32.mrf.mxu2  ;;  %v409_v51 = vrot.slane %v408_v43, 1 }
 0x17f   :  { %v333_v53 = vadd.f32 %v717_v18, %v332_v49  ;;  %v400_v49 = vrot.slane %v399_v39, 1 }
 0x180   :  { %v410_v59 = vmax.f32 %v408_v43, %v409_v51 }
 0x181   :  { %v354_v61 = vmax.f32 %v333_v53, 0.0  ;;  %v383_v53 = vmax.f32 %v381_v34, %v382_v45  ;;  %v401_v58 = vmax.f32 %v399_v39, %v400_v49 }
 0x183   :  { %v412_v3 = vsel %vm227_vm1, %v354_v61, -inf  ;;  %v438_v61 = vsel %vm437_vm2, %v374_v50, %v365_v55 }
 0x184   :  { %v413_v8 = vmax.f32 %v411_v6, %v412_v3  ;;  %v440_v63 = vsel %vm439_vm3, %v383_v53, %v438_v61 }
 0x185   :  { %v442_v1 = vsel %vm441_vm4, %v392_v56, %v440_v63 }
 0x186   :  { %v335_v11 = vpop.f32.mrf.mxu2  ;;  %v414_v16 = vrot.slane %v413_v8, 4  ;;  %v444_v2 = vsel %vm443_vm5, %v401_v58, %v442_v1 }
 0x187   :  { %v336_v21 = vadd.f32 %v717_v18, %v335_v11  ;;  %v446_v4 = vsel %vm445_vm6, %v410_v59, %v444_v2 }
 0x188   :  { %v415_v25 = vmax.f32 %v413_v8, %v414_v16 }
 0x189   :  { %v355_v30 = vmax.f32 %v336_v21, 0.0 }
 0x18a   :  { %v416_v35 = vrot.slane %v415_v25, 2 }
 0x18b   :  { %v420_v40 = vsel %vm227_vm1, %v355_v30, -inf }
 0x18c   :  { %v417_v46 = vmax.f32 %v415_v25, %v416_v35 }
 0x18e   :  { %v338_v28 = vpop.f32.mrf.mxu2  ;;  %v418_v54 = vrot.slane %v417_v46, 1 }
 0x18f   :  { %v339_v31 = vadd.f32 %v717_v18, %v338_v28 }
 0x190   :  { %v419_v62 = vmax.f32 %v417_v46, %v418_v54 }
 0x191   :  { %v356_v36 = vmax.f32 %v339_v31, 0.0 }
 0x192   :  { %v448_v5 = vsel %vm447_vm7, %v419_v62, %v446_v4 }
 0x193   :  { %v421_v41 = vsel %vm227_vm1, %v356_v36, -inf }
 0x194   :  { %v422_v44 = vmax.f32 %v420_v40, %v421_v41 }
 0x196   :  { %v423_v18 = vrot.slane %v422_v44, 4 }
 0x198   :  { %v424_v52 = vmax.f32 %v422_v44, %v423_v18 }
 0x19a   :  { %v425_v57 = vrot.slane %v424_v52, 2 }
 0x19c   :  { %v426_v60 = vmax.f32 %v424_v52, %v425_v57 }
 0x19e   :  { %v427_v0 = vrot.slane %v426_v60, 1 }
 0x1a0   :  { %v428_v3 = vmax.f32 %v426_v60, %v427_v0 }
 0x1a2   :  { %v450_v6 = vsel %vm449_vm8, %v428_v3, %v448_v5 }
 0x1a3   :  { %452 = vxpose.xlu0.b32.start.end [1/1] (short) (narrow) %v450_v6, 32 }
 0x247   :  { %v468_v7 = vpop.trf.xlu0 }
 0x248   :  { %485 = vst.msk [vmem:[%s768_s5] sm:$0xff] %vm484_vm9, %v468_v7 }
 0x24f   :  { %v469_v8 = vpop.trf.xlu0 }
 0x250   :  { %486 = vst.msk [vmem:[%s768_s5 + $0x8] sm:$0xff] %vm484_vm9, %v469_v8 }
 0x257   :  { %v470_v9 = vpop.trf.xlu0 }
 0x258   :  { %487 = vst.msk [vmem:[%s768_s5 + $0x10] sm:$0xff] %vm484_vm9, %v470_v9 }
 0x25f   :  { %v471_v10 = vpop.trf.xlu0 }
 0x260   :  { %488 = vst.msk [vmem:[%s768_s5 + $0x18] sm:$0xff] %vm484_vm9, %v471_v10 }
 0x261   :  { %493 = vsyncpa [#allocation3], 1 }
 0x262   :  { %494 = vsyncpa [#allocation5], 1 }

</bundles_post_ra>
